<compile_context>
chip_gen: v7x
topology: tpu7x:2x2x1
jax: 0.10.0
libtpu: 0.0.40
codegen_flags: <defaults>
</compile_context>

<pallas_src>
import functools

import jax
import jax.numpy as jnp
from jax.experimental import pallas as pl
from jax.experimental.pallas import tpu as pltpu


def _attention_kernel(xq_ref, xkv_ref, wq_ref, bq_ref, wkv_ref, bkv_ref,
                      wo_ref, bo_ref, o_ref, *, num_heads, head_dim):
    E = num_heads * head_dim
    cdt = wq_ref.dtype            # matmul-input dtype (bf16 in production config)

    xq = xq_ref[0]                # (tq, E)  query rows of this grid step
    xkv = xkv_ref[0]              # (S,  E)  full sequence rows (K/V source)
    tq = xq.shape[0]
    S = xkv.shape[0]

    # Q projection; 1/sqrt(head_dim) scaling is pre-folded into wq/bq host-side.
    q = (jnp.dot(xq.astype(cdt), wq_ref[...],
                 preferred_element_type=jnp.float32) + bq_ref[...])        # (tq, E)

    # Fused K|V projection: one matmul with N = 2E (better MXU pipelining,
    # one weight DMA stream, no drain/refill bubble between k and v).
    kv = (jnp.dot(xkv.astype(cdt), wkv_ref[...],
                  preferred_element_type=jnp.float32) + bkv_ref[...])      # (S, 2E)
    k = kv[:, :E]
    v = kv[:, E:]

    # Head-batched attention: single reshape+transpose to (H, rows, hd), then
    # batched dot_generals over the head axis (no per-head lane slicing).
    q3 = q.reshape(tq, num_heads, head_dim).transpose(1, 0, 2)             # (H, tq, hd)
    k3 = k.reshape(S, num_heads, head_dim).transpose(1, 0, 2)              # (H, S, hd)
    v3 = v.reshape(S, num_heads, head_dim).transpose(1, 0, 2)              # (H, S, hd)

    s = jnp.einsum("hqd,hkd->hqk", q3.astype(cdt), k3.astype(cdt),
                   preferred_element_type=jnp.float32)                     # (H, tq, S)

    # Softmax in f32; approx reciprocal goes to the EUP slot (nearly free).
    s = s - jnp.max(s, axis=-1, keepdims=True)
    p = jnp.exp(s)
    p = p * pl.reciprocal(jnp.sum(p, axis=-1, keepdims=True), approx=True)

    ctx = jnp.einsum("hqk,hkd->hqd", p.astype(cdt), v3.astype(cdt),
                     preferred_element_type=jnp.float32)                   # (H, tq, hd)
    ctx = ctx.transpose(1, 0, 2).reshape(tq, E)                            # (tq, E)

    out = (jnp.dot(ctx.astype(cdt), wo_ref[...],
                   preferred_element_type=jnp.float32) + bo_ref[...])
    # TODO(synk): when E < 128 (as in this toy shape) the store is lane-masked;
    # a lane-dense output view would avoid vst.msk but needs an in-kernel relayout.
    o_ref[0] = out.astype(o_ref.dtype)


def prepare_attention_params(params, *, num_heads, compute_dtype=jnp.bfloat16):
    """One-time host-side parameter transform.

    PyTorch nn.Linear weights are (out, in); pre-transpose to (in, out) so the
    kernel does x @ W. Also folds the 1/sqrt(head_dim) scaling into wq/bq,
    fuses k|v weights into one (E, 2E) matrix, and casts weights to the matmul
    compute dtype (biases stay f32). Done ONCE, outside the per-call path.
    """
    E = params["q_w"].shape[0]
    head_dim = E // num_heads
    scaling = head_dim ** (-0.5)
    return {
        "wq": (params["q_w"].T * scaling).astype(compute_dtype),
        "bq": (params["q_b"] * scaling).reshape(1, E).astype(jnp.float32),
        "wkv": jnp.concatenate([params["k_w"].T, params["v_w"].T],
                               axis=1).astype(compute_dtype),
        "bkv": jnp.concatenate([params["k_b"], params["v_b"]]
                               ).reshape(1, 2 * E).astype(jnp.float32),
        "wo": params["o_w"].T.astype(compute_dtype),
        "bo": params["o_b"].reshape(1, E).astype(jnp.float32),
    }


def cross_attention_pallas(hidden_states, prepped, *, num_heads, q_block=512):
    """hidden_states: [B, T, E]. Returns attn_output [B, T, E]."""
    B, T, E = hidden_states.shape
    head_dim = E // num_heads
    assert head_dim * num_heads == E

    # Query tiling: grid (B, T // tq). Keeps the (H, tq, S) score tile bounded
    # in VMEM and exposes parallelism beyond B for megacore / pipelining.
    if T > q_block and T % q_block == 0:
        tq = q_block
    else:
        tq = T   # TODO(synk): pad T to a multiple of 8 for arbitrary lengths.
    nq = T // tq

    kernel = functools.partial(_attention_kernel,
                               num_heads=num_heads, head_dim=head_dim)

    return pl.pallas_call(
        kernel,
        out_shape=jax.ShapeDtypeStruct((B, T, E), hidden_states.dtype),
        grid_spec=pltpu.PrefetchScalarGridSpec(
            num_scalar_prefetch=0,
            grid=(B, nq),
            in_specs=[
                pl.BlockSpec((1, tq, E), lambda b, qi: (b, qi, 0)),   # query rows
                pl.BlockSpec((1, T, E), lambda b, qi: (b, 0, 0)),     # full seq (K/V)
                pl.BlockSpec((E, E), lambda b, qi: (0, 0)),           # wq (scaled)
                pl.BlockSpec((1, E), lambda b, qi: (0, 0)),           # bq (scaled)
                pl.BlockSpec((E, 2 * E), lambda b, qi: (0, 0)),       # wkv fused
                pl.BlockSpec((1, 2 * E), lambda b, qi: (0, 0)),       # bkv fused
                pl.BlockSpec((E, E), lambda b, qi: (0, 0)),           # wo
                pl.BlockSpec((1, E), lambda b, qi: (0, 0)),           # bo
            ],
            out_specs=pl.BlockSpec((1, tq, E), lambda b, qi: (b, qi, 0)),
        ),
        # Note (v7x VMEM budget): weights are held in bf16 and index_maps are
        # constant, so the weight working set is E*(E + 2E + E)*2B bytes; for
        # very large E tile the projection N-dim with an extra grid axis.
        compiler_params=pltpu.CompilerParams(
            dimension_semantics=("parallel", "parallel"),
        ),
    )(hidden_states, hidden_states,
      prepped["wq"], prepped["bq"], prepped["wkv"], prepped["bkv"],
      prepped["wo"], prepped["bo"])


def cross_attention_reference(hidden_states, params, *, num_heads):
    """Plain-JAX reference mirroring the PyTorch forward (self-attn, no mask)."""
    B, T, E = hidden_states.shape
    hd = E // num_heads
    scaling = hd ** (-0.5)

    def lin(x, w, b):
        return x @ w.T + b

    q = lin(hidden_states, params["q_w"], params["q_b"]) * scaling
    k = lin(hidden_states, params["k_w"], params["k_b"])
    v = lin(hidden_states, params["v_w"], params["v_b"])

    def shape(t):  # (B, T, E) -> (B*H, T, hd)
        return t.reshape(B, T, num_heads, hd).transpose(0, 2, 1, 3).reshape(
            B * num_heads, T, hd)

    qh, kh, vh = shape(q), shape(k), shape(v)
    attn = jnp.einsum("btd,bsd->bts", qh, kh)
    attn = jax.nn.softmax(attn, axis=-1)
    ctx = jnp.einsum("bts,bsd->btd", attn, vh)
    ctx = ctx.reshape(B, num_heads, T, hd).transpose(0, 2, 1, 3).reshape(B, T, E)
    return lin(ctx, params["o_w"], params["o_b"])


def init_params(key, embed_dim):
    ks = jax.random.split(key, 8)
    s = 1.0 / jnp.sqrt(embed_dim)
    u = lambda k, shp: jax.random.uniform(k, shp, jnp.float32, -s, s)
    return {
        "q_w": u(ks[0], (embed_dim, embed_dim)), "q_b": u(ks[1], (embed_dim,)),
        "k_w": u(ks[2], (embed_dim, embed_dim)), "k_b": u(ks[3], (embed_dim,)),
        "v_w": u(ks[4], (embed_dim, embed_dim)), "v_b": u(ks[5], (embed_dim,)),
        "o_w": u(ks[6], (embed_dim, embed_dim)), "o_b": u(ks[7], (embed_dim,)),
    }


if __name__ == "__main__":
    B, T, E, H = 2, 8, 32, 4   # batch, seq (Time), embed_dim, num_heads

    key = jax.random.PRNGKey(0)
    k_x, k_p = jax.random.split(key)
    hidden_states = jax.random.normal(k_x, (B, T, E), dtype=jnp.float32)
    params = init_params(k_p, E)

    ref = cross_attention_reference(hidden_states, params, num_heads=H)

    # f32 compute path: near-exact check against the plain-JAX reference
    # (approx reciprocal in the softmax is the only deviation).
    prepped_f32 = prepare_attention_params(params, num_heads=H,
                                           compute_dtype=jnp.float32)
    out_f32 = jax.block_until_ready(
        cross_attention_pallas(hidden_states, prepped_f32, num_heads=H))
    assert out_f32.shape == (B, T, E)
    assert jnp.allclose(out_f32, ref, atol=5e-3, rtol=5e-3), "f32 mismatch vs reference"

    # bf16 matmul-input path (f32 accumulation/softmax): production config on
    # v5e/v6e/v7x per the perf review.
    prepped_bf16 = prepare_attention_params(params, num_heads=H,
                                            compute_dtype=jnp.bfloat16)
    out_bf16 = jax.block_until_ready(
        cross_attention_pallas(hidden_states, prepped_bf16, num_heads=H))
    assert jnp.allclose(out_bf16, ref, atol=5e-2, rtol=5e-2), "bf16 mismatch vs reference"

    # TODO(synk): dropout (training mode), attention_mask / extra_attn,
    # past_key_value and cross-attention (key_value_states) branches,
    # output_attentions/only_attn returns are not exercised here.
    print("KERNEL_OK")
</pallas_src>

<mosaic_0001>
module attributes {stable_mosaic.version = 11 : i64} {
  func.func @_attention_kernel(%arg0: i32, %arg1: i32, %arg2: memref<1x8x32xf32, #tpu.memory_space<vmem>>, %arg3: memref<1x8x32xf32, #tpu.memory_space<vmem>>, %arg4: memref<32x32xf32, #tpu.memory_space<vmem>>, %arg5: memref<1x32xf32, #tpu.memory_space<vmem>>, %arg6: memref<32x64xf32, #tpu.memory_space<vmem>>, %arg7: memref<1x64xf32, #tpu.memory_space<vmem>>, %arg8: memref<32x32xf32, #tpu.memory_space<vmem>>, %arg9: memref<1x32xf32, #tpu.memory_space<vmem>>, %arg10: memref<1x8x32xf32, #tpu.memory_space<vmem>>) attributes {dimension_semantics = [#tpu.dimension_semantics<parallel>, #tpu.dimension_semantics<parallel>], iteration_bounds = array<i64: 2, 1>, scalar_prefetch = 0 : i64, scratch_operands = 0 : i64, tpu.core_type = #tpu.core_type<tc>, window_params = [{transform_indices = @transform_0, window_bounds = array<i64: 1, 8, 32>}, {transform_indices = @transform_1, window_bounds = array<i64: 1, 8, 32>}, {pipeline_mode = #tpu.pipeline_mode<synchronous>, transform_indices = @transform_2, window_bounds = array<i64: 32, 32>}, {pipeline_mode = #tpu.pipeline_mode<synchronous>, transform_indices = @transform_3, window_bounds = array<i64: 1, 32>}, {pipeline_mode = #tpu.pipeline_mode<synchronous>, transform_indices = @transform_4, window_bounds = array<i64: 32, 64>}, {pipeline_mode = #tpu.pipeline_mode<synchronous>, transform_indices = @transform_5, window_bounds = array<i64: 1, 64>}, {pipeline_mode = #tpu.pipeline_mode<synchronous>, transform_indices = @transform_6, window_bounds = array<i64: 32, 32>}, {pipeline_mode = #tpu.pipeline_mode<synchronous>, transform_indices = @transform_7, window_bounds = array<i64: 1, 32>}, {transform_indices = @transform_8, window_bounds = array<i64: 1, 8, 32>}]} {
    %c0 = arith.constant 0 : index
    %c0_0 = arith.constant 0 : index
    %c0_1 = arith.constant 0 : index
    %0 = vector.load %arg2[%c0, %c0_0, %c0_1] : memref<1x8x32xf32, #tpu.memory_space<vmem>>, vector<1x8x32xf32>
    %1 = vector.shape_cast %0 : vector<1x8x32xf32> to vector<8x32xf32>
    %c0_2 = arith.constant 0 : index
    %c0_3 = arith.constant 0 : index
    %c0_4 = arith.constant 0 : index
    %2 = vector.load %arg3[%c0_2, %c0_3, %c0_4] : memref<1x8x32xf32, #tpu.memory_space<vmem>>, vector<1x8x32xf32>
    %3 = vector.shape_cast %2 : vector<1x8x32xf32> to vector<8x32xf32>
    %c0_5 = arith.constant 0 : index
    %c0_6 = arith.constant 0 : index
    %4 = vector.load %arg4[%c0_5, %c0_6] : memref<32x32xf32, #tpu.memory_space<vmem>>, vector<32x32xf32>
    %cst = arith.constant dense<0.000000e+00> : vector<8x32xf32>
    %5 = tpu.matmul %1, %4, %cst {dimension_numbers = #tpu.dot_dimension_numbers<[1], [0], [0], [1], [0, 0, 1, 1], [], []>} : vector<8x32xf32>, vector<32x32xf32>, vector<8x32xf32> -> vector<8x32xf32>
    %c0_7 = arith.constant 0 : index
    %c0_8 = arith.constant 0 : index
    %6 = vector.load %arg5[%c0_7, %c0_8] : memref<1x32xf32, #tpu.memory_space<vmem>>, vector<1x32xf32>
    %7 = vector.broadcast %6 : vector<1x32xf32> to vector<8x32xf32>
    %8 = arith.addf %5, %7 : vector<8x32xf32>
    %c0_9 = arith.constant 0 : index
    %c0_10 = arith.constant 0 : index
    %9 = vector.load %arg6[%c0_9, %c0_10] : memref<32x64xf32, #tpu.memory_space<vmem>>, vector<32x64xf32>
    %cst_11 = arith.constant dense<0.000000e+00> : vector<8x64xf32>
    %10 = tpu.matmul %3, %9, %cst_11 {dimension_numbers = #tpu.dot_dimension_numbers<[1], [0], [0], [1], [0, 0, 1, 1], [], []>} : vector<8x32xf32>, vector<32x64xf32>, vector<8x64xf32> -> vector<8x64xf32>
    %c0_12 = arith.constant 0 : index
    %c0_13 = arith.constant 0 : index
    %11 = vector.load %arg7[%c0_12, %c0_13] : memref<1x64xf32, #tpu.memory_space<vmem>>, vector<1x64xf32>
    %12 = vector.broadcast %11 : vector<1x64xf32> to vector<8x64xf32>
    %13 = arith.addf %10, %12 : vector<8x64xf32>
    %14 = vector.extract_strided_slice %13 {offsets = [0, 0], sizes = [8, 32], strides = [1, 1]} : vector<8x64xf32> to vector<8x32xf32>
    %15 = vector.extract_strided_slice %13 {offsets = [0, 32], sizes = [8, 32], strides = [1, 1]} : vector<8x64xf32> to vector<8x32xf32>
    %16 = vector.shape_cast %8 : vector<8x32xf32> to vector<8x4x8xf32>
    %17 = tpu.transpose %16, [1, 0, 2] : vector<8x4x8xf32> -> vector<4x8x8xf32>
    %18 = vector.shape_cast %14 : vector<8x32xf32> to vector<8x4x8xf32>
    %19 = tpu.transpose %18, [1, 0, 2] : vector<8x4x8xf32> -> vector<4x8x8xf32>
    %20 = vector.shape_cast %15 : vector<8x32xf32> to vector<8x4x8xf32>
    %21 = tpu.transpose %20, [1, 0, 2] : vector<8x4x8xf32> -> vector<4x8x8xf32>
    "tpu.trace_start"() <{level = 10 : i32, message = "hqd,hkd->hqk"}> : () -> ()
    %cst_14 = arith.constant dense<0.000000e+00> : vector<4x8x8xf32>
    %22 = tpu.matmul %17, %19, %cst_14 {dimension_numbers = #tpu.dot_dimension_numbers<[2], [2], [1], [1], [0, 0, 0, 1, 1, 1], [0], [0]>} : vector<4x8x8xf32>, vector<4x8x8xf32>, vector<4x8x8xf32> -> vector<4x8x8xf32>
    "tpu.trace_stop"() : () -> ()
    %cst_15 = arith.constant dense<0xFF800000> : vector<4x8xf32>
    %23 = vector.multi_reduction <maximumf>, %22, %cst_15 [2] : vector<4x8x8xf32> to vector<4x8xf32>
    %24 = vector.shape_cast %23 : vector<4x8xf32> to vector<4x8x1xf32>
    %25 = vector.broadcast %24 : vector<4x8x1xf32> to vector<4x8x8xf32>
    %26 = arith.subf %22, %25 : vector<4x8x8xf32>
    %27 = math.exp %26 : vector<4x8x8xf32>
    %cst_16 = arith.constant dense<0.000000e+00> : vector<4x8xf32>
    %28 = vector.multi_reduction <add>, %27, %cst_16 [2] : vector<4x8x8xf32> to vector<4x8xf32>
    %29 = vector.shape_cast %28 : vector<4x8xf32> to vector<4x8x1xf32>
    %30 = tpu.reciprocal %29 {approx = true} : vector<4x8x1xf32> -> vector<4x8x1xf32>
    %31 = vector.broadcast %30 : vector<4x8x1xf32> to vector<4x8x8xf32>
    %32 = arith.mulf %27, %31 : vector<4x8x8xf32>
    "tpu.trace_start"() <{level = 10 : i32, message = "hqk,hkd->hqd"}> : () -> ()
    %cst_17 = arith.constant dense<0.000000e+00> : vector<4x8x8xf32>
    %33 = tpu.matmul %32, %21, %cst_17 {dimension_numbers = #tpu.dot_dimension_numbers<[2], [1], [1], [2], [0, 0, 0, 1, 1, 2], [0], [0]>} : vector<4x8x8xf32>, vector<4x8x8xf32>, vector<4x8x8xf32> -> vector<4x8x8xf32>
    "tpu.trace_stop"() : () -> ()
    %34 = tpu.transpose %33, [1, 0, 2] : vector<4x8x8xf32> -> vector<8x4x8xf32>
    %35 = vector.shape_cast %34 : vector<8x4x8xf32> to vector<8x32xf32>
    %c0_18 = arith.constant 0 : index
    %c0_19 = arith.constant 0 : index
    %36 = vector.load %arg8[%c0_18, %c0_19] : memref<32x32xf32, #tpu.memory_space<vmem>>, vector<32x32xf32>
    %cst_20 = arith.constant dense<0.000000e+00> : vector<8x32xf32>
    %37 = tpu.matmul %35, %36, %cst_20 {dimension_numbers = #tpu.dot_dimension_numbers<[1], [0], [0], [1], [0, 0, 1, 1], [], []>} : vector<8x32xf32>, vector<32x32xf32>, vector<8x32xf32> -> vector<8x32xf32>
    %c0_21 = arith.constant 0 : index
    %c0_22 = arith.constant 0 : index
    %38 = vector.load %arg9[%c0_21, %c0_22] : memref<1x32xf32, #tpu.memory_space<vmem>>, vector<1x32xf32>
    %39 = vector.broadcast %38 : vector<1x32xf32> to vector<8x32xf32>
    %40 = arith.addf %37, %39 : vector<8x32xf32>
    %c0_23 = arith.constant 0 : index
    %c0_24 = arith.constant 0 : index
    %c0_25 = arith.constant 0 : index
    %41 = vector.load %arg10[%c0_23, %c0_24, %c0_25] : memref<1x8x32xf32, #tpu.memory_space<vmem>>, vector<1x8x32xf32>
    %42 = vector.shape_cast %41 : vector<1x8x32xf32> to vector<8x32xf32>
    %43 = vector.shape_cast %40 : vector<8x32xf32> to vector<1x8x32xf32>
    tpu.vector_store %arg10[%c0_23, %c0_24, %c0_25], %43 {strides = array<i32>} : memref<1x8x32xf32, #tpu.memory_space<vmem>>, vector<1x8x32xf32>,
    return
  }
  func.func @transform_0(%arg0: i32, %arg1: i32) -> (i32, i32, i32) {
    %c0_i32 = arith.constant 0 : i32
    %c0_i32_0 = arith.constant 0 : i32
    return %arg0, %arg1, %c0_i32 : i32, i32, i32
  }
  func.func @transform_1(%arg0: i32, %arg1: i32) -> (i32, i32, i32) {
    %c0_i32 = arith.constant 0 : i32
    %c0_i32_0 = arith.constant 0 : i32
    %c0_i32_1 = arith.constant 0 : i32
    return %arg0, %c0_i32, %c0_i32_0 : i32, i32, i32
  }
  func.func @transform_2(%arg0: i32, %arg1: i32) -> (i32, i32) {
    %c0_i32 = arith.constant 0 : i32
    %c0_i32_0 = arith.constant 0 : i32
    %c0_i32_1 = arith.constant 0 : i32
    return %c0_i32, %c0_i32_0 : i32, i32
  }
  func.func @transform_3(%arg0: i32, %arg1: i32) -> (i32, i32) {
    %c0_i32 = arith.constant 0 : i32
    %c0_i32_0 = arith.constant 0 : i32
    %c0_i32_1 = arith.constant 0 : i32
    return %c0_i32, %c0_i32_0 : i32, i32
  }
  func.func @transform_4(%arg0: i32, %arg1: i32) -> (i32, i32) {
    %c0_i32 = arith.constant 0 : i32
    %c0_i32_0 = arith.constant 0 : i32
    %c0_i32_1 = arith.constant 0 : i32
    return %c0_i32, %c0_i32_0 : i32, i32
  }
  func.func @transform_5(%arg0: i32, %arg1: i32) -> (i32, i32) {
    %c0_i32 = arith.constant 0 : i32
    %c0_i32_0 = arith.constant 0 : i32
    %c0_i32_1 = arith.constant 0 : i32
    return %c0_i32, %c0_i32_0 : i32, i32
  }
  func.func @transform_6(%arg0: i32, %arg1: i32) -> (i32, i32) {
    %c0_i32 = arith.constant 0 : i32
    %c0_i32_0 = arith.constant 0 : i32
    %c0_i32_1 = arith.constant 0 : i32
    return %c0_i32, %c0_i32_0 : i32, i32
  }
  func.func @transform_7(%arg0: i32, %arg1: i32) -> (i32, i32) {
    %c0_i32 = arith.constant 0 : i32
    %c0_i32_0 = arith.constant 0 : i32
    %c0_i32_1 = arith.constant 0 : i32
    return %c0_i32, %c0_i32_0 : i32, i32
  }
  func.func @transform_8(%arg0: i32, %arg1: i32) -> (i32, i32, i32) {
    %c0_i32 = arith.constant 0 : i32
    %c0_i32_0 = arith.constant 0 : i32
    return %arg0, %arg1, %c0_i32 : i32, i32, i32
  }
}

</mosaic_0001>

<bundles_post_ra>
// kernel: tpu_custom_call.1
= control target key start
LH: loop header
LB: loop body
LE: loop exit
PB: predicated region body
PF: predicated region fallthrough
CT: control target
= control target key end

     0   :  { %s3159_s0 = inlined_call_operand.hbm [shape: f32[2,8,32], index: 0, kind: input, shape index: {}]   ;;  %s3160_s1 = inlined_call_operand.hbm [shape: f32[2,8,32], index: 1, kind: input, shape index: {}]   ;;  %s3161_s2 = inlined_call_operand.hbm [shape: f32[32,32], index: 2, kind: input, shape index: {}]   ;;  %s3162_s3 = inlined_call_operand.vmem [shape: f32[1,32], index: 3, kind: input, shape index: {}]   ;;  %s3163_s4 = inlined_call_operand.hbm [shape: f32[32,64], index: 4, kind: input, shape index: {}]   ;;  %s3164_s5 = inlined_call_operand.vmem [shape: f32[1,64], index: 5, kind: input, shape index: {}]   ;;  %s3165_s6 = inlined_call_operand.hbm [shape: f32[32,32], index: 6, kind: input, shape index: {}]   ;;  %s3166_s7 = inlined_call_operand.vmem [shape: f32[1,32], index: 7, kind: input, shape index: {}]   ;;  %s3167_s8 = inlined_call_operand.hbm [shape: f32[2,8,32], index: 8, kind: output, shape index: {}]  }
   0x1   :  { %3175 = sst [smem:[#allocation19_spill]] %s3161_s2 }
   0x2   :  { %3176 = sst [smem:[#allocation20_spill]] %s3163_s4 }
   0x3   :  { %3177 = sst [smem:[#allocation21_spill]] %s3165_s6 }
   0x4   :  { %3178 = sst [smem:[#allocation22_spill]] %s3166_s7 }
   0x5   :  { %3179 = sst [smem:[#allocation23_spill]] %s3167_s8 }
   0x6   :  { %13 = vsyncpa [#allocation3], 0 }
   0x7   :  { %15 = vsyncpa [#allocation3 + $0x1], 0 }
   0x8   :  { %16 = vsyncpa [#allocation6], 0 }
   0x9   :  { %18 = vsyncpa [#allocation6 + $0x1], 0 }
   0xa   :  { %19 = vsyncpa [#allocation9], 0 }
   0xb   :  { %20 = vsyncpa [#allocation4], 0 }
   0xc   :  { %22 = vsyncpa [#allocation4 + $0x1], 0  ;;  %s2657_s27 = smov 0   ;;  %s2659_s28 = smov 0  }
   0xd   :  { %s2661_s29 = smov 0   ;;  %s2663_s30 = smov 0  }
   0xe   :  { %s2665_s9 = smov 0   ;;  %s2667_s10 = smov 0  }
   0xf LB: > { %3180 = sst [smem:[#allocation17_spill]] %s2570_s27  ;;  %s2688_s11 = sadd.s32 4294967295, %s2590_s10   ;;  %s2590_s10 = sphi %s2667_s10, %s28_s10   ;;  %s2586_s9 = sphi %s2665_s9, %s3210_s9   ;;  %s2582_s30 = sphi %s2663_s30, %s3209_s30   ;;  %s2578_s29 = sphi %s2661_s29, %s3208_s29   ;;  %s2574_s28 = sphi %s2659_s28, %s3207_s28   ;;  %s2570_s27 = sphi %s2657_s27, %s3206_s27  }
  0x10   : > { %s2055_s12 = sadd.s32 4294967294, %s2590_s10   ;;  %p62_p0 = scmp.ne.s32.totalorder %s2574_s28, %s2570_s27 }
  0x11   : > { %p3168_p1 = scmp.eq.s32.totalorder %s2688_s11, 0  ;;  %p246_p3 = scmp.eq.s32.totalorder %s2055_s12, 1 }
  0x12   : > { %p2056_p5 = scmp.ge.s32.totalorder %s2590_s10, 1  ;;  %p253_p7 = scmp.lt.s32.totalorder %s2590_s10, 3 }
  0x13   : > { %p2697_p4 = por %p3168_p1, %p62_p0  ;;  %p2702_p6 = por %p246_p3, %p62_p0 }
  0x14   : > { %p2707_p8 = pnand %p2056_p5, %p253_p7  ;;  %s2592_s16 = smov [#allocation7]  }
  0x15   : > { %s3181_s13 = scalar_select %p2697_p4, 1, 0 }
  0x16   : > { %s3182_s14 = scalar_select %p2702_p6, 1, 0 }
  0x17   : > { %s3184_s15 = scalar_select %p2707_p8, 1, 0 }
  0x18   : > { %3183 = sst [smem:[#allocation18_spill]] %s3182_s14  ;;  %s265_s17 = sshll.u32 %s2592_s16, 4  ;;  %s2711_s17 = int_to_ptr.vmem [resolvable:$true] %s265_s17 }
  0x19   : > { %p2242_p9 = pneg %p2707_p8  ;;  %s2593_s19 = smov [#allocation8]  }
  0x1a   : > { %s281_s20 = sshll.u32 %s2593_s19, 4  ;;  %s2594_s21 = smov [#allocation10]   ;;  %s2722_s20 = int_to_ptr.vmem [resolvable:$true] %s281_s20 }
  0x1b   : > { %p2718_p11 = pnand %p2242_p9, %p3168_p1  ;;  %s2724_s22 = sshll.u32 %s2594_s21, 4  ;;  %s298_s22 = int_to_ptr.vmem [resolvable:$true] %s2724_s22 }
  0x1c   : > { %s3186_s2 = sld [smem:[#allocation19_spill]] }
  0x1d   : > { %p2734_p13 = pneg %p2718_p11 }
  0x22   : > { %s2352_s25 = scalar_lea.hbm %s3186_s2, 512 }
  0x23   : > { %p2353_p12 = scmp.ne.s32.totalorder %s3186_s2, %s2352_s25  ;;  %p2359_p5 = scmp.lt.u32.totalorder %s2352_s25, %s3186_s2 }
  0x25   : > { %p2355_p0 = pnand %p2734_p13, %p2353_p12 }
  0x27   : > { %p2356_p3 = pneg %p2355_p0 }
  0x29   : > { %p2361_p7 = pnand %p2359_p5, %p2356_p3 }
  0x2b   : > { %2364 = shalt.err (!%p2361_p7)
}
  0x2c   : > { %s2365_s23 = scalar_lea.vmem %s2711_s17, 512  ;;  %p2373_p2 = scmp.lt.s32.totalorder %s2711_s17, %s2711_s17 }
  0x2d   : > { %p2366_p9 = scmp.ne.s32.totalorder %s2711_s17, %s2365_s23  ;;  %p2374_p6 = scmp.lt.s32.totalorder %s2365_s23, %s2365_s23 }
  0x2f   : > { %p2368_p10 = pnand %p2366_p9, %p2734_p13  ;;  %p2375_p12 = por %p2374_p6, %p2373_p2 }
  0x31   : > { %p2369_p1 = pneg %p2368_p10 }
  0x33   : > { %p2376_p0 = pnand %p2375_p12, %p2369_p1 }
  0x35   : > { %2379 = shalt.err (!%p2376_p0)
}
  0x36   : > { %s2595_s24 = smov 128   ;;  %s2596_s25 = smov 8  }
  0x37   : > { %2245 = dma.hbm_to_vmem [thread:$0]  (!%p2718_p11), %s3186_s2, 512, %s2711_s17, [#allocation6], %s2595_s24, %s2595_s24, %s2596_s25  }
  0x38   : > { %s3188_s4 = sld [smem:[#allocation20_spill]] }
  0x3e   : > { %s2380_s23 = scalar_lea.hbm %s3188_s4, 512 }
  0x3f   : > { %p2381_p1 = scmp.ne.s32.totalorder %s3188_s4, %s2380_s23  ;;  %p2387_p10 = scmp.lt.u32.totalorder %s2380_s23, %s3188_s4 }
  0x41   : > { %p2383_p2 = pnand %p2381_p1, %p2734_p13 }
  0x43   : > { %p2384_p6 = pneg %p2383_p2 }
  0x45   : > { %p2389_p3 = pnand %p2387_p10, %p2384_p6 }
  0x47   : > { %2392 = shalt.err (!%p2389_p3)
}
  0x48   : > { %s2393_s17 = scalar_lea.vmem %s2722_s20, 512  ;;  %p2401_p12 = scmp.lt.s32.totalorder %s2722_s20, %s2722_s20 }
  0x49   : > { %p2394_p5 = scmp.ne.s32.totalorder %s2722_s20, %s2393_s17  ;;  %p2402_p0 = scmp.lt.s32.totalorder %s2393_s17, %s2393_s17 }
  0x4b   : > { %p2396_p7 = pnand %p2394_p5, %p2734_p13  ;;  %p2403_p1 = por %p2402_p0, %p2401_p12 }
  0x4d   : > { %p2397_p9 = pneg %p2396_p7 }
  0x4f   : > { %p2404_p2 = pnand %p2403_p1, %p2397_p9 }
  0x51   : > { %2407 = shalt.err (!%p2404_p2)
}
  0x52   : > { %2248 = dma.hbm_to_vmem [thread:$0]  (!%p2718_p11), %s3188_s4, 512, %s2722_s20, [#allocation9], %s2595_s24, %s2595_s24, %s2596_s25  }
  0x53   : > { %s3189_s6 = sld [smem:[#allocation21_spill]] }
  0x59   : > { %s2408_s26 = scalar_lea.hbm %s3189_s6, 512 }
  0x5a   : > { %p2409_p6 = scmp.ne.s32.totalorder %s3189_s6, %s2408_s26  ;;  %p2415_p5 = scmp.lt.u32.totalorder %s2408_s26, %s3189_s6 }
  0x5c   : > { %p2411_p10 = pnand %p2409_p6, %p2734_p13 }
  0x5e   : > { %p2412_p3 = pneg %p2411_p10 }
  0x60   : > { %p2417_p7 = pnand %p2415_p5, %p2412_p3 }
  0x62   : > { %2420 = shalt.err (!%p2417_p7)
}
  0x63   : > { %s2421_s17 = scalar_lea.vmem %s298_s22, 512  ;;  %p2429_p1 = scmp.lt.s32.totalorder %s298_s22, %s298_s22 }
  0x64   : > { %p2422_p9 = scmp.ne.s32.totalorder %s298_s22, %s2421_s17  ;;  %p2430_p2 = scmp.lt.s32.totalorder %s2421_s17, %s2421_s17 }
  0x66   : > { %p2424_p12 = pnand %p2422_p9, %p2734_p13  ;;  %p2431_p4 = por %p2430_p2, %p2429_p1 }
  0x68   : > { %p2425_p0 = pneg %p2424_p12 }
  0x6a   : > { %p2432_p8 = pnand %p2431_p4, %p2425_p0 }
  0x6c   : > { %2435 = shalt.err (!%p2432_p8)
}
  0x6d   : > { %2251 = dma.hbm_to_vmem [thread:$0]  (!%p2718_p11), %s3189_s6, 512, %s298_s22, [#allocation9], %s2595_s24, %s2595_s24, %s2596_s25  }
  0x6e   : > { %s49_s16 = sadd.s32 1, %s2578_s29  ;;  %s40_s18 = sadd.s32 1, %s2586_s9 }
  0x6f   : > { %p56_p4 = scmp.ne.s32.totalorder %s2578_s29, %s2574_s28  ;;  %p42_p8 = scmp.ge.s32.totalorder %s40_s18, 2 }
  0x70   : > { %p57_p13 = scmp.eq.s32.totalorder %s2590_s10, 0  ;;  %p3190_p6 = scmp.eq.s32.totalorder %s2688_s11, 1 }
  0x71   : > { %p2266_p3 = scmp.lt.s32.totalorder %s2590_s10, 2  ;;  %s3212_s18 = smov (%p42_p8, %s40_s18), 0 }
  0x72   : > { %p2813_p10 = por %p3190_p6, %p56_p4  ;;  %p58_p5 = por %p57_p13, %p56_p4 }
  0x73   : > { %s314_s27 = sand.u32 1, %s2578_s29   ;;  %s44_s14 = ssub.s32 %s2586_s9, %s3212_s18 }
  0x74   : > { %s3191_s8 = scalar_select %p2813_p10, 1, 0 }
  0x75   : > { %p47_p11 = scmp.eq.s32.totalorder %s44_s14, 0  ;;  %s2823_s22 = sshll.u32 %s314_s27, 3 }
  0x76   : > { %s2062_s24 = sshll.u32 %s2586_s9, 7  ;;  %s318_s21 = scalar_lea.vmem [#allocation2], %s2823_s22 }
  0x77   : > { %s2827_s25 = scalar_select %p47_p11, %s2578_s29, %s49_s16  }
  0x78   : > { %s2832_s19 = scalar_lea.hbm %s3159_s0, %s2062_s24  ;;  %s326_s23 = sshll.u32 %s318_s21, 4  ;;  %s2835_s23 = int_to_ptr.vmem [resolvable:$true] %s326_s23 }
  0x79   : > { %p2839_p7 = pnand %p2266_p3, %p58_p5  ;;  %s2846_s16 = scalar_lea.hbm %s3160_s1, %s2062_s24 }
  0x7a   : > { %s333_s14 = sand.u32 1, %s2590_s10   ;;  %s315_s26 = scalar_lea.sflag [#allocation3], %s314_s27 }
  0x7b   : > { %s2436_s12 = scalar_lea.hbm %s2832_s19, 128  ;;  %p2438_p12 = pneg %p2839_p7 }
  0x7c   : > { %p2437_p9 = scmp.ne.s32.totalorder %s2832_s19, %s2436_s12  ;;  %s2441_s4 = scalar_lea.hbm %s3159_s0, 256 }
  0x7d   : > { %p2442_p2 = scmp.lt.u32.totalorder %s2832_s19, %s3159_s0  ;;  %p2443_p4 = scmp.lt.u32.totalorder %s2441_s4, %s2436_s12 }
  0x7e   : > { %p2439_p0 = pnand %p2438_p12, %p2437_p9  ;;  %p2445_p13 = scmp.lt.u32.totalorder %s2436_s12, %s2832_s19 }
  0x7f   : > { %p2444_p8 = por %p2443_p4, %p2442_p2 }
  0x80   : > { %p2440_p1 = pneg %p2439_p0 }
  0x81   : > { %p2446_p6 = por %p2445_p13, %p2444_p8 }
  0x83   : > { %p2447_p3 = pnand %p2446_p6, %p2440_p1 }
  0x85   : > { %2450 = shalt.err (!%p2447_p3)
}
  0x86   : > { %s2451_s27 = scalar_lea.vmem %s2835_s23, 128  ;;  %s2597_s2 = smov [#allocation2]  }
  0x87   : > { %p2452_p5 = scmp.ne.s32.totalorder %s2835_s23, %s2451_s27  ;;  %s2456_s24 = sshll.u32 %s2597_s2, 4  ;;  %s2457_s24 = int_to_ptr.vmem [resolvable:$false] %s2456_s24 }
  0x88   : > { %s2458_s6 = scalar_lea.vmem %s2457_s24, 256  ;;  %p2459_p0 = scmp.lt.s32.totalorder %s2835_s23, %s2457_s24 }
  0x89   : > { %p2454_p11 = pnand %p2452_p5, %p2438_p12  ;;  %p2460_p2 = scmp.lt.s32.totalorder %s2458_s6, %s2451_s27 }
  0x8b   : > { %p2455_p9 = pneg %p2454_p11  ;;  %p2461_p4 = por %p2460_p2, %p2459_p0 }
  0x8d   : > { %p2462_p8 = pnand %p2461_p4, %p2455_p9 }
  0x8f   : > { %2465 = shalt.err (!%p2462_p8)
}
  0x90   : > { %2255 = dma.hbm_to_vmem [thread:$0]  (!%p2839_p7), %s2832_s19, 128, %s2835_s23, %s315_s26  }
  0x91   : > { %s337_s4 = scalar_lea.vmem [#allocation5], %s2823_s22  ;;  %s334_s12 = scalar_lea.sflag [#allocation6], %s333_s14 }
  0x92   : > { %s344_s7 = sshll.u32 %s337_s4, 4  ;;  %s2466_s21 = scalar_lea.hbm %s2846_s16, 128  ;;  %s345_s7 = int_to_ptr.vmem [resolvable:$true] %s344_s7 }
  0x93   : > { %p2467_p1 = scmp.ne.s32.totalorder %s2846_s16, %s2466_s21  ;;  %s2471_s2 = scalar_lea.hbm %s3160_s1, 256 }
  0x94   : > { %p2472_p3 = scmp.lt.u32.totalorder %s2846_s16, %s3160_s1  ;;  %p2473_p5 = scmp.lt.u32.totalorder %s2471_s2, %s2466_s21 }
  0x95   : > { %p2469_p13 = pnand %p2467_p1, %p2438_p12  ;;  %p2475_p9 = scmp.lt.u32.totalorder %s2466_s21, %s2846_s16 }
  0x96   : > { %p2474_p11 = por %p2473_p5, %p2472_p3 }
  0x97   : > { %p2470_p6 = pneg %p2469_p13 }
  0x98   : > { %p2476_p0 = por %p2475_p9, %p2474_p11 }
  0x9a   : > { %p2477_p2 = pnand %p2476_p0, %p2470_p6 }
  0x9c   : > { %2480 = shalt.err (!%p2477_p2)
}
  0x9d   : > { %s2481_s22 = scalar_lea.vmem %s345_s7, 128  ;;  %s2598_s19 = smov [#allocation5]  }
  0x9e   : > { %p2482_p4 = scmp.ne.s32.totalorder %s345_s7, %s2481_s22  ;;  %s2486_s23 = sshll.u32 %s2598_s19, 4  ;;  %s2487_s23 = int_to_ptr.vmem [resolvable:$false] %s2486_s23 }
  0x9f   : > { %s2488_s14 = scalar_lea.vmem %s2487_s23, 256  ;;  %p2489_p13 = scmp.lt.s32.totalorder %s345_s7, %s2487_s23 }
  0xa0   : > { %p2484_p8 = pnand %p2482_p4, %p2438_p12  ;;  %p2490_p10 = scmp.lt.s32.totalorder %s2488_s14, %s2481_s22 }
  0xa2   : > { %p2485_p1 = pneg %p2484_p8  ;;  %p2491_p3 = por %p2490_p10, %p2489_p13 }
  0xa4   : > { %p2492_p5 = pnand %p2491_p3, %p2485_p1 }
  0xa6   : > { %2495 = shalt.err (!%p2492_p5)
}
  0xa7   : > { %2258 = dma.hbm_to_vmem [thread:$0]  (!%p2839_p7), %s2846_s16, 128, %s345_s7, %s334_s12  }
  0xa8   : > { %p3193_p6 = scmp.ne.s32.totalorder %s3184_s15, 0 }
  0xa9   : > { %s2899_s26 = sand.u32 (!%p3193_p6), 1, %s2574_s28   ;;  %p3194_p10 = scmp.ne.s32.totalorder (!%p3193_p6), %s3181_s13, 0 }
  0xaa   : > { %353 = sbr.rel (%p3193_p6) target bundleno = 1680 (0x690), region = 52  ;;  %s2902_s4 = sshll.u32 (!%p3193_p6), %s2899_s26, 3 }
  0xab   : > { %s356_s21 = scalar_lea.sflag (!%p3193_p6), [#allocation3], %s2899_s26  ;;  %s359_s20 = scalar_lea.vmem (!%p3193_p6), [#allocation2], %s2902_s4 }
  0xb1   : > { %2549 = dma.done.wait (%p3194_p10), %s356_s21, 128  }
  0xb2   : > { %2551 = vsyncadd (%p3194_p10), %s356_s21, 4294967168  ;;  %s364_s15 = sand.u32 1, %s2688_s11   ;;  %s368_s16 = scalar_lea.vmem [#allocation5], %s2902_s4 }
  0xb3   : > { %s365_s17 = scalar_lea.sflag [#allocation6], %s364_s15 }
  0xb4   : > { %2553 = dma.done.wait (%p3194_p10), %s365_s17, 128  }
  0xb5   : > { %2555 = vsyncadd (%p3194_p10), %s365_s17, 4294967168  ;;  %p3195_p7 = scmp.eq.s32.totalorder %s2688_s11, 0 }
  0xb7   : > { %2557 = dma.done.wait (%p3195_p7), [#allocation6], 512   ;;  %p3196_p12 = pmov %p3195_p7 }
  0xb8   : > { %p3197_p11 = pmov %p3195_p7 }
  0xb9   : > { %2559 = vsyncadd (%p3196_p12), [#allocation6], 4294966784 }
  0xba   : > { %2561 = dma.done.wait (%p3197_p11), [#allocation9], 1024   ;;  %p3198_p9 = pmov %p3195_p7 }
  0xbb   : > { %v2599_v0 = vmov 0.0|0.0   ;;  %vm2600_vm0 = vmmov 0   ;;  %v2601_v1 = vmov 0.0   ;;  %v505_v2 = vld [vmem:[#allocation8] sm:$0xff]  ;;  %v506_v3 = vld [vmem:[#allocation8 + $0x8] sm:$0xff]  ;;  %v507_v7 = vld [vmem:[#allocation8 + $0x10] sm:$0xff]  ;;  %v604_v26 = vlaneseq }
  0xbc   : > { %2563 = vsyncadd (%p3198_p9), [#allocation9], 4294966272  ;;  %2212 = vmatprep.subr.bf16.mxu1 %v2599_v0  ;;  %2206 = vmatprep.subr.bf16.mxu0 %v2599_v0  ;;  %v420_v4 = vld [vmem:[#allocation7] sm:$0xff]  ;;  %v2213_v5 = vpack.c.bf16 %v506_v3, %v505_v2  ;;  %v421_v6 = vld [vmem:[#allocation7 + $0x8] sm:$0xff]  ;;  %vm431_vm1 = vcmask 261120   ;;  %s2602_s27 = smov 104  }
  0xbd   : > { %2152 = vmatprep.mubr.msk.f32.mxu1 %vm2600_vm0, %v2601_v1  ;;  %2141 = vmatprep.mubr.msk.f32.mxu0 %vm2600_vm0, %v2601_v1  ;;  %v508_v8 = vld [vmem:[#allocation8 + $0x18] sm:$0xff]  ;;  %v2207_v9 = vpack.c.bf16 %v421_v6, %v420_v4  ;;  %v422_v10 = vld [vmem:[#allocation7 + $0x10] sm:$0xff]  ;;  %v418_v15 = vld [vmem:[%s359_s20] sm:$0xff]  ;;  %s2603_s2 = smov 120   ;;  %s2604_s24 = smov 112   ;;  %v605_v30 = vshrl.u32 %v604_v26, 7 }
  0xbe   : > { %v423_v11 = vld [vmem:[#allocation7 + $0x18] sm:$0xff]  ;;  %2214 = vmatpush3.bf16.msra.mxu1 %v2213_v5  ;;  %v2216_v12 = vpack.c.bf16 %v508_v8, %v507_v7  ;;  %v2074_v16 = vld [vmem:[%s3164_s5] ss:$0 sm:$0xff]  ;;  %v2605_v24 = vmov 1983009808   ;;  %vm1029_vm2 = vcmask 64512  }
  0xbf   : > { %2208 = vmatpush3.bf16.msra.mxu0 %v2207_v9  ;;  %2215 = vmatprep.subr.bf16.mxu1 %v2599_v0  ;;  %v2210_v13 = vpack.c.bf16 %v423_v11, %v422_v10  ;;  %v419_v14 = vld [vmem:[%s368_s16] sm:$0xff]  ;;  %v2072_v18 = vld [vmem:[%s3162_s3] ss:$0 sm:$0xff]  ;;  %v602_v25 = vunpack.c.l.s4 %v2605_v24  ;;  %v2606_v27 = vmov 1934713408   ;;  %s2607_s6 = smov 96  }
  0xc0   : > { %2209 = vmatprep.subr.bf16.mxu0 %v2599_v0  ;;  %v634_v28 = vunpack.c.l.s4 %v2606_v27  ;;  %s2608_s22 = smov 16   ;;  %s2609_s19 = smov 8   ;;  %vm1819_vm3 = vcmask 130048   ;;  %vm1821_vm4 = vcmask 195584  }
  0xc1   : > { %v603_v29 = vunpack.c.0.s8 %v602_v25  ;;  %s2610_s23 = smov 24   ;;  %s3199_s20 = sld [smem:[#allocation22_spill]] }
  0xc2   : > { %2217 = vmatpush3.bf16.msra.mxu1 %v2216_v12  ;;  %v635_v33 = vunpack.c.0.s8 %v634_v28  ;;  %s2099_s15 = sshll.u32 %s2582_s30, 7  ;;  %s417_s17 = scalar_lea.vmem [#allocation11], %s2902_s4 }
  0xc3   : > { %2211 = vmatpush3.bf16.msra.mxu0 %v2210_v13  ;;  %2155 = vmatprep.subr.mxu1 %v2601_v1  ;;  %v2959_v34 = vsub.s32 %v603_v29, %v605_v30  ;;  %s1923_s16 = sshll.u32 %s417_s17, 4  ;;  %s3200_s7 = sld [smem:[#allocation23_spill]]  ;;  %s3111_s16 = int_to_ptr.vmem [resolvable:$true] %s1923_s16 }
  0xc4   : > { %2165 = vmatprep.subr.mxu0 %v2601_v1  ;;  %v2971_v41 = vsub.s32 %v635_v33, %v605_v30  ;;  %p3201_p2 = scmp.ne.s32.totalorder %s3191_s8, 0  ;;  %s2611_s30 = smov [#allocation11]  }
  0xc5   : > { %2153 = vmatmul.mubr.msk.f32.vlgmr.msra.gmra.mrb[0].mxu1 %vm431_vm1, %v419_v14  ;;  %s2500_s4 = sshll.u32 %s2611_s30, 4  ;;  %s2501_s4 = int_to_ptr.vmem [resolvable:$false] %s2500_s4 }
  0xc6   : > { %2142 = vmatmul.mubr.msk.f32.vlgmr.msra.gmra.mrb[0].mxu0 %vm431_vm1, %v418_v15  ;;  %2157 = vmatprep.mubr.msk.f32.mxu1 %vm2600_vm0, %v2601_v1  ;;  %p2503_p1 = scmp.lt.s32.totalorder %s3111_s16, %s2501_s4 }
  0xc7   : > { %2167 = vmatprep.mubr.msk.f32.mxu0 %vm2600_vm0, %v2601_v1 }
  0xc9   : > { %s3109_s12 = scalar_lea.hbm %s3200_s7, %s2099_s15 }
 0x198   : > { %v585_v17 = vpop.f32.mrb[0].mxu1 }
 0x199   : > { %v2950_v19 = vadd.f32 %v2074_v16, %v585_v17  ;;  %v2154_v20 = vpop.f32.mrb[1].mxu1  ;;  %v501_v21 = vpop.f32.mrb[0].mxu0 }
 0x19a   : > { %v2143_v22 = vpop.f32.mrb[1].mxu0  ;;  %v502_v23 = vadd.f32 %v2072_v18, %v501_v21 }
 0x19b   : > { %742 = vrot.lane.b32.xlu1 %v2950_v19, %s2602_s27  ;;  %736 = vrot.lane.b32.xlu0 %v2950_v19, %s2603_s2 }
 0x19f   : > { %739 = vrot.lane.b32.xlu0 %v2950_v19, %s2604_s24  ;;  %590 = vrot.lane.b32.xlu1 %v502_v23, %s2603_s2  ;;  %s2496_s2 = scalar_lea.vmem %s3111_s16, 128 }
 0x1a0   : > { %p2497_p0 = scmp.ne.s32.totalorder %s3111_s16, %s2496_s2 }
 0x1a2   : > { %p2498_p4 = pnand %p2497_p0, %p3201_p2 }
 0x1a3   : > { %593 = vrot.lane.b32.xlu0 %v502_v23, %s2604_s24  ;;  %596 = vrot.lane.b32.xlu1 %v502_v23, %s2602_s27  ;;  %s1909_s27 = scalar_lea.sflag [#allocation4], %s2899_s26  ;;  %s2502_s24 = scalar_lea.vmem %s2501_s4, 256 }
 0x1a4   : > { %p2499_p8 = pneg %p2498_p4  ;;  %p2504_p13 = scmp.lt.s32.totalorder %s2502_s24, %s2496_s2 }
 0x1a6   : > { %p2505_p3 = por %p2504_p13, %p2503_p1 }
 0x1a8   : > { %p2506_p5 = pnand %p2505_p3, %p2499_p8 }
 0x20d   : > { %v2955_v31 = vpop.permute.xlu1 %742  ;;  %v2957_v32 = vpop.permute.xlu0 %736 }
 0x20e   : > { %v761_v35 = vcombine.low %v2957_v32, %v2955_v31  ;;  %v762_v36 = vcombine.high %v2957_v32, %v2955_v31 }
 0x210   : > { %v769_v42 = vrot.slane %v761_v35, %v2959_v34  ;;  %v776_v43 = vrot.slane %v762_v36, %v2959_v34 }
 0x211   : > { %v2965_v37 = vpop.permute.xlu0 %739  ;;  %v591_v38 = vpop.permute.xlu1 %590 }
 0x212   : > { %v745_v39 = vcombine.low %v2950_v19, %v2965_v37  ;;  %v746_v40 = vcombine.high %v2950_v19, %v2965_v37 }
 0x214   : > { %v753_v44 = vrot.slane %v745_v39, %v2959_v34  ;;  %v760_v45 = vrot.slane %v746_v40, %v2959_v34 }
 0x215   : > { %v594_v46 = vpop.permute.xlu0 %593  ;;  %v597_v47 = vpop.permute.xlu1 %596 }
 0x216   : > { %v777_v48 = vcombine.low %v753_v44, %v769_v42  ;;  %v778_v49 = vcombine.high %v753_v44, %v769_v42  ;;  %v793_v50 = vcombine.low %v760_v45, %v776_v43  ;;  %v794_v51 = vcombine.high %v760_v45, %v776_v43 }
 0x217   : > { %v599_v52 = vcombine.low %v502_v23, %v594_v46  ;;  %v600_v53 = vcombine.high %v502_v23, %v594_v46  ;;  %v615_v54 = vcombine.low %v591_v38, %v597_v47  ;;  %v616_v55 = vcombine.high %v591_v38, %v597_v47 }
 0x218   : > { %v785_v56 = vrot.slane %v777_v48, %v2971_v41  ;;  %v792_v57 = vrot.slane %v778_v49, %v2971_v41  ;;  %v801_v58 = vrot.slane %v793_v50, %v2971_v41  ;;  %v808_v59 = vrot.slane %v794_v51, %v2971_v41 }
 0x219   : > { %v607_v60 = vrot.slane %v599_v52, %v2959_v34  ;;  %v614_v61 = vrot.slane %v600_v53, %v2959_v34  ;;  %v623_v62 = vrot.slane %v615_v54, %v2959_v34  ;;  %v630_v63 = vrot.slane %v616_v55, %v2959_v34 }
 0x21a   : > { %v813_v2 = vcombine.low %v785_v56, %v792_v57  ;;  %v2078_v3 = vcombine.high %v785_v56, %v792_v57  ;;  %v829_v4 = vcombine.low %v801_v58, %v808_v59  ;;  %v2079_v5 = vcombine.high %v801_v58, %v808_v59 }
 0x21b   : > { %v631_v6 = vcombine.low %v607_v60, %v623_v62  ;;  %v632_v7 = vcombine.high %v607_v60, %v623_v62  ;;  %v647_v8 = vcombine.low %v614_v61, %v630_v63  ;;  %v648_v9 = vcombine.high %v614_v61, %v630_v63 }
 0x21c   : > { %v820_v10 = vrot.slane %v813_v2, %v2959_v34  ;;  %v828_v11 = vrot.slane %v2078_v3, %v2959_v34  ;;  %v836_v12 = vrot.slane %v829_v4, %v2959_v34  ;;  %v844_v13 = vrot.slane %v2079_v5, %v2959_v34 }
 0x21d   : > { %v639_v14 = vrot.slane %v631_v6, %v2971_v41  ;;  %v646_v15 = vrot.slane %v632_v7, %v2971_v41  ;;  %v655_v16 = vrot.slane %v647_v8, %v2971_v41  ;;  %v662_v17 = vrot.slane %v648_v9, %v2971_v41 }
 0x21e   : > { %v845_v18 = vcombine.low %v820_v10, %v828_v11  ;;  %v846_v20 = vcombine.high %v820_v10, %v828_v11  ;;  %v861_v21 = vcombine.low %v836_v12, %v844_v13  ;;  %v862_v22 = vcombine.high %v836_v12, %v844_v13 }
 0x21f   : > { %v667_v23 = vcombine.low %v639_v14, %v646_v15  ;;  %v2076_v24 = vcombine.high %v639_v14, %v646_v15  ;;  %v683_v25 = vcombine.low %v655_v16, %v662_v17  ;;  %v2077_v26 = vcombine.high %v655_v16, %v662_v17 }
 0x220   : > { %v853_v27 = vrot.slane %v845_v18, %v2971_v41  ;;  %v869_v28 = vrot.slane %v861_v21, %v2971_v41  ;;  %v860_v29 = vrot.slane %v846_v20, %v2971_v41  ;;  %v876_v30 = vrot.slane %v862_v22, %v2971_v41 }
 0x221   : > { %v674_v33 = vrot.slane %v667_v23, %v2959_v34  ;;  %v682_v35 = vrot.slane %v2076_v24, %v2959_v34  ;;  %v690_v36 = vrot.slane %v683_v25, %v2959_v34  ;;  %v698_v38 = vrot.slane %v2077_v26, %v2959_v34 }
 0x222   : > { %v877_v39 = vcombine.low %v853_v27, %v869_v28  ;;  %v879_v40 = vcombine.low %v860_v29, %v876_v30  ;;  %v878_v52 = vcombine.high %v853_v27, %v869_v28  ;;  %v880_v54 = vcombine.high %v860_v29, %v876_v30 }
 0x223   : > { %v699_v42 = vcombine.low %v674_v33, %v682_v35  ;;  %v700_v43 = vcombine.high %v674_v33, %v682_v35  ;;  %v715_v44 = vcombine.low %v690_v36, %v698_v38  ;;  %v716_v45 = vcombine.high %v690_v36, %v698_v38 }
 0x224   : > { %2156 = vmatpush3.xpose.msk.msra.mxu1 %vm1029_vm2, %v877_v39  ;;  %2166 = vmatpush3.xpose.msk.msra.mxu0 %vm1029_vm2, %v879_v40 }
 0x225   : > { %2160 = vmatprep.subr.mxu1 %v2601_v1  ;;  %v707_v46 = vrot.slane %v699_v42, %v2971_v41  ;;  %v723_v47 = vrot.slane %v715_v44, %v2971_v41  ;;  %v714_v48 = vrot.slane %v700_v43, %v2971_v41  ;;  %v730_v49 = vrot.slane %v716_v45, %v2971_v41 }
 0x226   : > { %2175 = vmatprep.subr.mxu0 %v2601_v1 }
 0x227   : > { %v731_v50 = vcombine.low %v707_v46, %v723_v47  ;;  %v733_v51 = vcombine.low %v714_v48, %v730_v49  ;;  %v732_v53 = vcombine.high %v707_v46, %v723_v47  ;;  %v734_v55 = vcombine.high %v714_v48, %v730_v49 }
 0x229   : > { %2158 = vmatmul.mubr.msk.f32.vlgmr.msra.gmra.mrb[2].mxu1 %vm1029_vm2, %v731_v50  ;;  %2168 = vmatmul.mubr.msk.f32.vlgmr.msra.gmra.mrb[2].mxu0 %vm1029_vm2, %v733_v51 }
 0x22a   : > { %2161 = vmatpush3.xpose.msk.msra.mxu1 %vm1029_vm2, %v878_v52  ;;  %2162 = vmatprep.mubr.msk.f32.mxu1 %vm2600_vm0, %v2601_v1 }
 0x22b   : > { %2170 = vmatprep.subr.mxu1 %v2601_v1  ;;  %2177 = vmatprep.mubr.msk.f32.mxu0 %vm2600_vm0, %v2601_v1 }
 0x22d   : > { %2163 = vmatmul.mubr.msk.f32.vlgmr.msra.gmra.mrb[4].mxu1 %vm1029_vm2, %v732_v53 }
 0x22e   : > { %2171 = vmatpush3.xpose.msk.msra.mxu1 %vm1029_vm2, %v880_v54  ;;  %2172 = vmatprep.mubr.msk.f32.mxu1 %vm2600_vm0, %v2601_v1 }
 0x22f   : > { %2180 = vmatprep.subr.mxu1 %v2601_v1 }
 0x231   : > { %2173 = vmatmul.mubr.msk.f32.vlgmr.msra.gmra.mrb[6].mxu1 %vm1029_vm2, %v734_v55 }
 0x232   : > { %2182 = vmatprep.mubr.msk.f32.mxu1 %vm2600_vm0, %v2601_v1 }
 0x2fc   : > { %v1102_v56 = vpop.f32.mrb[2].mxu1  ;;  %v1254_v57 = vpop.f32.mrb[2].mxu0 }
 0x2fd   : > { %v2159_v58 = vpop.f32.mrb[3].mxu1  ;;  %v2169_v59 = vpop.f32.mrb[3].mxu0  ;;  %v1334_v60 = vsel %vm1029_vm2, %v1102_v56, -inf  ;;  %v1340_v2 = vsel %vm1029_vm2, %v1254_v57, -inf }
 0x2fe   : > { %1335 = vmax.xlane.f32.xlu0 %v1334_v60 }
 0x300   : > { %v1178_v61 = vpop.f32.mrb[4].mxu1 }
 0x301   : > { %v2164_v62 = vpop.f32.mrb[5].mxu1  ;;  %v1337_v63 = vsel %vm1029_vm2, %v1178_v61, -inf }
 0x302   : > { %1338 = vmax.xlane.f32.xlu1 %v1337_v63  ;;  %1341 = vmax.xlane.f32.xlu0 %v1340_v2 }
 0x304   : > { %v1330_v3 = vpop.f32.mrb[6].mxu1 }
 0x305   : > { %v2174_v4 = vpop.f32.mrb[7].mxu1  ;;  %v1343_v5 = vsel %vm1029_vm2, %v1330_v3, -inf }
 0x306   : > { %1344 = vmax.xlane.f32.xlu0 %v1343_v5 }
 0x313   : > { %881 = vrot.lane.b32.xlu1 %v2950_v19, %s2607_s6 }
 0x38b   : > { %v1336_v6 = vpop.xlane.xlu0 %1335 }
 0x38c   : > { %v1346_v7 = vsub.f32 %v1102_v56, %v1336_v6 }
 0x38e   : > { %v1350_v8 = vmul.f32 1.442695, %v1346_v7 }
 0x38f   : > { %v1339_v9 = vpop.xlane.xlu1 %1338  ;;  %v1342_v10 = vpop.xlane.xlu0 %1341 }
 0x390   : > { %2336 = vpow2.f32 %v1350_v8  ;;  %v1347_v11 = vsub.f32 %v1178_v61, %v1339_v9  ;;  %v1348_v12 = vsub.f32 %v1254_v57, %v1342_v10 }
 0x392   : > { %v1352_v13 = vmul.f32 1.442695, %v1347_v11  ;;  %v1354_v14 = vmul.f32 1.442695, %v1348_v12 }
 0x393   : > { %v1345_v15 = vpop.xlane.xlu0 %1344  ;;  %v882_v26 = vpop.permute.xlu1 %881 }
 0x394   : > { %2338 = vpow2.f32 %v1352_v13  ;;  %v1349_v16 = vsub.f32 %v1330_v3, %v1345_v15 }
 0x395   : > { %2340 = vpow2.f32 %v1354_v14 }
 0x396   : > { %v1356_v17 = vmul.f32 1.442695, %v1349_v16 }
 0x398   : > { %2342 = vpow2.f32 %v1356_v17 }
 0x39a   : > { %v3031_v18 = vpop.eup %2336 }
 0x39b   : > { %v1358_v19 = vsel %vm1029_vm2, %v3031_v18, 0.0 }
 0x39c   : > { %1359 = vadd.xlane.f32.xlu1 %v1358_v19  ;;  %v1824_v19 = vld [vmem:[#allocation10 + $0x8] sm:$0xff] }
 0x39e   : > { %v2339_v20 = vpop.eup %2338 }
 0x39f   : > { %v3035_v21 = vpop.eup %2340  ;;  %v1361_v22 = vsel %vm1029_vm2, %v2339_v20, 0.0 }
 0x3a0   : > { %1362 = vadd.xlane.f32.xlu0 %v1361_v22  ;;  %v1364_v23 = vsel %vm1029_vm2, %v3035_v21, 0.0 }
 0x3a1   : > { %1365 = vadd.xlane.f32.xlu1 %v1364_v23 }
 0x3a2   : > { %v3040_v24 = vpop.eup %2342 }
 0x3a3   : > { %v1367_v25 = vsel %vm1029_vm2, %v3040_v24, 0.0 }
 0x3a4   : > { %1368 = vadd.xlane.f32.xlu0 %v1367_v25 }
 0x3b2   : > { %885 = vrot.lane.b32.xlu1 %v2965_v37, %s2607_s6 }
 0x3b6   : > { %887 = vrot.lane.b32.xlu1 %v2955_v31, %s2607_s6 }
 0x3ba   : > { %883 = vrot.lane.b32.xlu0 %v2957_v32, %s2607_s6 }
 0x429   : > { %v1360_v27 = vpop.xlane.xlu1 %1359 }
 0x42a   : > { %2344 = vrcp.f32 %v1360_v27 }
 0x42d   : > { %v1363_v28 = vpop.xlane.xlu0 %1362 }
 0x42e   : > { %v1366_v29 = vpop.xlane.xlu1 %1365  ;;  %2346 = vrcp.f32 %v1363_v28 }
 0x42f   : > { %2348 = vrcp.f32 %v1366_v29 }
 0x431   : > { %v1369_v30 = vpop.xlane.xlu0 %1368 }
 0x432   : > { %v886_v33 = vpop.permute.xlu1 %885  ;;  %2350 = vrcp.f32 %v1369_v30 }
 0x433   : > { %v893_v35 = vcombine.low %v882_v26, %v886_v33  ;;  %v894_v36 = vcombine.high %v882_v26, %v886_v33 }
 0x434   : > { %v2345_v62 = vpop.eup %2344 }
 0x435   : > { %v884_v38 = vpop.permute.xlu0 %883  ;;  %v901_v37 = vrot.slane %v893_v35, %v2959_v34  ;;  %v908_v43 = vrot.slane %v894_v36, %v2959_v34  ;;  %v1374_v11 = vmul.f32 %v2345_v62, %v3031_v18  ;;  %v1823_v18 = vld [vmem:[#allocation10] sm:$0xff] }
 0x436   : > { %v888_v39 = vpop.permute.xlu1 %887 }
 0x437   : > { %v909_v40 = vcombine.low %v884_v38, %v888_v39  ;;  %v910_v42 = vcombine.high %v884_v38, %v888_v39 }
 0x438   : > { %v2347_v4 = vpop.eup %2346 }
 0x439   : > { %v917_v31 = vrot.slane %v909_v40, %v2959_v34  ;;  %v924_v32 = vrot.slane %v910_v42, %v2959_v34  ;;  %v2349_v10 = vpop.eup %2348  ;;  %v1375_v12 = vmul.f32 %v2347_v4, %v2339_v20  ;;  %v2219_v20 = vpack.c.bf16 %v1824_v19, %v1823_v18 }
 0x43a   : > { %v1376_v16 = vmul.f32 %v2349_v10, %v3035_v21  ;;  %v2096_v10 = vld [vmem:[%s3199_s20] ss:$0 sm:$0xff] }
 0x43b   : > { %v925_v44 = vcombine.low %v901_v37, %v917_v31  ;;  %v926_v45 = vcombine.high %v901_v37, %v917_v31  ;;  %v941_v46 = vcombine.low %v908_v43, %v924_v32  ;;  %v942_v47 = vcombine.high %v908_v43, %v924_v32  ;;  %v1825_v43 = vld [vmem:[#allocation10 + $0x10] sm:$0xff]  ;;  %v1826_v31 = vld [vmem:[#allocation10 + $0x18] sm:$0xff] }
 0x43c   : > { %v2351_v13 = vpop.eup %2350 }
 0x43d   : > { %v933_v48 = vrot.slane %v925_v44, %v2971_v41  ;;  %v940_v49 = vrot.slane %v926_v45, %v2971_v41  ;;  %v949_v50 = vrot.slane %v941_v46, %v2971_v41  ;;  %v956_v51 = vrot.slane %v942_v47, %v2971_v41 }
 0x43e   : > { %v1377_v17 = vmul.f32 %v2351_v13, %v3040_v24  ;;  %v2222_v47 = vpack.c.bf16 %v1826_v31, %v1825_v43 }
 0x43f   : > { %v961_v52 = vcombine.low %v933_v48, %v940_v49  ;;  %v2080_v53 = vcombine.high %v933_v48, %v940_v49  ;;  %v977_v54 = vcombine.low %v949_v50, %v956_v51  ;;  %v2081_v55 = vcombine.high %v949_v50, %v956_v51 }
 0x441   : > { %v968_v56 = vrot.slane %v961_v52, %v2959_v34  ;;  %v976_v57 = vrot.slane %v2080_v53, %v2959_v34  ;;  %v984_v58 = vrot.slane %v977_v54, %v2959_v34  ;;  %v992_v59 = vrot.slane %v2081_v55, %v2959_v34 }
 0x443   : > { %v993_v60 = vcombine.low %v968_v56, %v976_v57  ;;  %v994_v61 = vcombine.high %v968_v56, %v976_v57  ;;  %v1009_v63 = vcombine.low %v984_v58, %v992_v59  ;;  %v1010_v2 = vcombine.high %v984_v58, %v992_v59 }
 0x445   : > { %v1001_v3 = vrot.slane %v993_v60, %v2971_v41  ;;  %v1017_v5 = vrot.slane %v1009_v63, %v2971_v41  ;;  %v1008_v6 = vrot.slane %v994_v61, %v2971_v41  ;;  %v1024_v7 = vrot.slane %v1010_v2, %v2971_v41 }
 0x447   : > { %v1025_v8 = vcombine.low %v1001_v3, %v1017_v5  ;;  %v1026_v9 = vcombine.high %v1001_v3, %v1017_v5  ;;  %v1027_v14 = vcombine.low %v1008_v6, %v1024_v7  ;;  %v1028_v15 = vcombine.high %v1008_v6, %v1024_v7 }
 0x449   : > { %2176 = vmatpush3.msra.mxu0 %v1025_v8  ;;  %2181 = vmatpush3.msra.mxu1 %v1026_v9 }
 0x44a   : > { %2178 = vmatmul.mubr.msk.f32.vlgmr.msra.gmra.mrb[4].mxu0 %vm1029_vm2, %v1374_v11  ;;  %2183 = vmatmul.mubr.msk.f32.vlgmr.msra.gmra.mrb[8].mxu1 %vm1029_vm2, %v1375_v12 }
 0x44b   : > { %2185 = vmatprep.subr.mxu0 %v2601_v1  ;;  %2190 = vmatprep.subr.mxu1 %v2601_v1 }
 0x44c   : > { %2186 = vmatpush3.msra.mxu0 %v1027_v14  ;;  %2191 = vmatpush3.msra.mxu1 %v1028_v15 }
 0x44d   : > { %2187 = vmatprep.mubr.msk.f32.mxu0 %vm2600_vm0, %v2601_v1  ;;  %2192 = vmatprep.mubr.msk.f32.mxu1 %vm2600_vm0, %v2601_v1 }
 0x44e   : > { %2188 = vmatmul.mubr.msk.f32.vlgmr.msra.gmra.mrb[6].mxu0 %vm1029_vm2, %v1376_v16  ;;  %2193 = vmatmul.mubr.msk.f32.vlgmr.msra.gmra.mrb[10].mxu1 %vm1029_vm2, %v1377_v17 }
 0x44f   : > { %2218 = vmatprep.subr.bf16.mxu0 %v2599_v0  ;;  %2203 = vmatprep.mubr.msk.f32.mxu0 %vm2600_vm0, %v2601_v1 }
 0x450   : > { %2220 = vmatpush3.bf16.msra.mxu0 %v2219_v20 }
 0x451   : > { %2221 = vmatprep.subr.bf16.mxu0 %v2599_v0 }
 0x454   : > { %2223 = vmatpush3.bf16.msra.mxu0 %v2222_v47 }
 0x51d   : > { %v1447_v21 = vpop.f32.mrb[4].mxu0  ;;  %v1520_v22 = vpop.f32.mrb[8].mxu1 }
 0x51e   : > { %v2179_v23 = vpop.f32.mrb[5].mxu0  ;;  %v2184_v24 = vpop.f32.mrb[9].mxu1 }
 0x521   : > { %v1593_v25 = vpop.f32.mrb[6].mxu0  ;;  %v1666_v26 = vpop.f32.mrb[10].mxu1 }
 0x522   : > { %v1670_v27 = vcombine.low %v1447_v21, %v1593_v25  ;;  %v1671_v28 = vcombine.high %v1447_v21, %v1593_v25  ;;  %v1686_v29 = vcombine.low %v1520_v22, %v1666_v26  ;;  %v1687_v30 = vcombine.high %v1520_v22, %v1666_v26  ;;  %v2189_v33 = vpop.f32.mrb[7].mxu0  ;;  %v2194_v35 = vpop.f32.mrb[11].mxu1 }
 0x524   : > { %v1678_v1 = vrot.slane %v1670_v27, %v2959_v34  ;;  %v1685_v36 = vrot.slane %v1671_v28, %v2959_v34  ;;  %v1694_v38 = vrot.slane %v1686_v29, %v2959_v34  ;;  %v1701_v0 = vrot.slane %v1687_v30, %v2959_v34 }
 0x526   : > { %v1702_v39 = vcombine.low %v1678_v1, %v1694_v38  ;;  %v1703_v40 = vcombine.high %v1678_v1, %v1694_v38  ;;  %v1718_v42 = vcombine.low %v1685_v36, %v1701_v0  ;;  %v1719_v37 = vcombine.high %v1685_v36, %v1701_v0 }
 0x528   : > { %v1710_v32 = vrot.slane %v1702_v39, %v2971_v41  ;;  %v1717_v44 = vrot.slane %v1703_v40, %v2971_v41  ;;  %v1726_v45 = vrot.slane %v1718_v42, %v2971_v41  ;;  %v1733_v46 = vrot.slane %v1719_v37, %v2971_v41 }
 0x52a   : > { %v1738_v48 = vcombine.low %v1710_v32, %v1717_v44  ;;  %v2094_v49 = vcombine.high %v1710_v32, %v1717_v44  ;;  %v1754_v50 = vcombine.low %v1726_v45, %v1733_v46  ;;  %v2095_v51 = vcombine.high %v1726_v45, %v1733_v46 }
 0x52c   : > { %v1745_v52 = vrot.slane %v1738_v48, %v2959_v34  ;;  %v1753_v53 = vrot.slane %v2094_v49, %v2959_v34  ;;  %v1761_v54 = vrot.slane %v1754_v50, %v2959_v34  ;;  %v1769_v55 = vrot.slane %v2095_v51, %v2959_v34 }
 0x52e   : > { %v1771_v56 = vcombine.high %v1745_v52, %v1753_v53  ;;  %v1787_v57 = vcombine.high %v1761_v54, %v1769_v55  ;;  %v1770_v58 = vcombine.low %v1745_v52, %v1753_v53  ;;  %v1786_v59 = vcombine.low %v1761_v54, %v1769_v55 }
 0x530   : > { %v1785_v60 = vrot.slane %v1771_v56, %v2971_v41  ;;  %v1801_v61 = vrot.slane %v1787_v57, %v2971_v41  ;;  %v1778_v62 = vrot.slane %v1770_v58, %v2971_v41  ;;  %v1794_v63 = vrot.slane %v1786_v59, %v2971_v41 }
 0x532   : > { %v1804_v2 = vcombine.low %v1785_v60, %v1801_v61  ;;  %v1803_v3 = vcombine.high %v1778_v62, %v1794_v63  ;;  %v1805_v4 = vcombine.high %v1785_v60, %v1801_v61  ;;  %v1802_v5 = vcombine.low %v1778_v62, %v1794_v63 }
 0x534   : > { %1811 = vrot.lane.b32.xlu1 %v1804_v2, %s2608_s22  ;;  %1807 = vrot.lane.b32.xlu0 %v1803_v3, %s2609_s19 }
 0x538   : > { %1815 = vrot.lane.b32.xlu0 %v1805_v4, %s2610_s23 }
 0x5a6   : > { %v1808_v34 = vpop.permute.xlu0 %1807  ;;  %v1812_v6 = vpop.permute.xlu1 %1811 }
 0x5a7   : > { %v1818_v7 = vsel %vm1029_vm2, %v1802_v5, %v1808_v34 }
 0x5a8   : > { %v1820_v8 = vsel %vm1819_vm3, %v1818_v7, %v1812_v6 }
 0x5aa   : > { %v1816_v41 = vpop.permute.xlu0 %1815 }
 0x5ab   : > { %v1822_v9 = vsel %vm1821_vm4, %v1820_v8, %v1816_v41 }
 0x5ac   : > { %2204 = vmatmul.mubr.msk.f32.vlgmr.msra.gmra.mrb[8].mxu0 %vm431_vm1, %v1822_v9 }
 0x67f   : > { %v1903_v11 = vpop.f32.mrb[8].mxu0 }
 0x680   : > { %v1904_v12 = vadd.f32 %v2096_v10, %v1903_v11  ;;  %v2205_v13 = vpop.f32.mrb[9].mxu0 }
 0x682   : > { %1907 = vst.msk [vmem:[%s417_s17] sm:$0xff] %vm431_vm1, %v1904_v12 }
 0x683   : > { %2509 = shalt.err (!%p2506_p5)
}
 0x684   : > { %s2510_s26 = scalar_lea.hbm %s3109_s12, 128  ;;  %s2514_s19 = scalar_lea.hbm %s3200_s7, 256 }
 0x685   : > { %p2511_p6 = scmp.ne.s32.totalorder %s3109_s12, %s2510_s26  ;;  %p2515_p12 = scmp.lt.u32.totalorder %s3109_s12, %s3200_s7 }
 0x686   : > { %p2516_p11 = scmp.lt.u32.totalorder %s2514_s19, %s2510_s26  ;;  %p2518_p0 = scmp.lt.u32.totalorder %s2510_s26, %s3109_s12 }
 0x687   : > { %p2512_p10 = pnand %p2511_p6, %p3201_p2 }
 0x688   : > { %p2517_p9 = por %p2516_p11, %p2515_p12 }
 0x689   : > { %p2513_p7 = pneg %p2512_p10 }
 0x68a   : > { %p2519_p4 = por %p2518_p0, %p2517_p9 }
 0x68c   : > { %p2520_p8 = pnand %p2519_p4, %p2513_p7 }
 0x68e   : > { %2523 = shalt.err (!%p2520_p8)
}
 0x68f   : > { %2240 = dma.vmem_to_hbm [thread:$0]  (%p3201_p2), %s3111_s16, 128, %s3109_s12, %s1909_s27  }
 0x690 PF: > { %s3202_s21 = sld [smem:[#allocation17_spill]]  ;;  %s3203_s20 = sld [smem:[#allocation18_spill]] }
 0x691   : > { %p3205_p13 = scmp.ge.s32.totalorder %s2590_s10, 2 }
 0x696   : > { %s1935_s15 = sand.u32 1, %s3202_s21   ;;  %p3204_p1 = scmp.ne.s32.totalorder %s3203_s20, 0 }
 0x697   : > { %s1936_s17 = scalar_lea.sflag [#allocation4], %s1935_s15 }
 0x698   : > { %p2260_p3 = pnand %p3205_p13, %p3204_p1 }
 0x69a   : > { %2565 = dma.done.wait (!%p2260_p3), %s1936_s17, 128  }
 0x69b   : > { %2567 = vsyncadd (!%p2260_p3), %s1936_s17, 4294967168  ;;  %s28_s10 = sadd.s32 1, %s2590_s10   ;;  %s3206_s27 = smov %s2574_s28 }
 0x69c   : > { %p25_p5 = scmp.ge.s32.totalorder %s28_s10, 4   ;;  %s3207_s28 = smov %s2578_s29 }
 0x69d   : > { %s3208_s29 = smov %s2827_s25  ;;  %s3209_s30 = smov %s2586_s9 }
 0x69e   : > { %s3210_s9 = smov %s3212_s18  ;;  %27 = sbr.rel (!%p25_p5) target bundleno = 15 (0xf), region = 122 }
 0x6a5   :  { %1941 = vsyncpa [#allocation3], 1 }
 0x6a6   :  { %1943 = vsyncpa [#allocation3 + $0x1], 1 }
 0x6a7   :  { %1944 = vsyncpa [#allocation6], 1 }
 0x6a8   :  { %1946 = vsyncpa [#allocation6 + $0x1], 1 }
 0x6a9   :  { %1947 = vsyncpa [#allocation9], 1 }
 0x6aa   :  { %1948 = vsyncpa [#allocation4], 1 }
 0x6ab   :  { %1950 = vsyncpa [#allocation4 + $0x1], 1 }

</bundles_post_ra>
